<compile_context>
chip_gen: v6e
topology: v6e:2x2x1
jax: 0.10.0
libtpu: 0.0.40
codegen_flags: <defaults>
</compile_context>

<pallas_src>
import math

import jax
import jax.numpy as jnp
from jax.experimental import pallas as pl
from jax.experimental.pallas import tpu as pltpu


def _round_up(x: int, m: int) -> int:
    return ((x + m - 1) // m) * m


def _pick_tile(dim: int, candidates=(512, 256, 128)) -> int:
    """Largest candidate tile that evenly divides `dim`, else the full dim."""
    for c in candidates:
        if dim >= c and dim % c == 0:
            return c
    return dim


def _pick_attn_block(T: int) -> int:
    """Attention tile size: 256 on 256x256-MXU chips, 128 on v5e-class."""
    if T < 128:
        return _round_up(max(T, 8), 8)
    kind = ""
    try:
        kind = jax.devices()[0].device_kind.lower()
    except Exception:  # pragma: no cover - defensive
        pass
    small_mxu = any(v in kind for v in ("v2", "v3", "v4", "v5"))
    return 256 if (not small_mxu and T >= 256) else 128


# ---------------------------------------------------------------------------
# Linear (x @ W + b), W stored as (in, out).  Tiled over M, N and K.
# ---------------------------------------------------------------------------
def _linear_kernel(x_ref, w_ref, b_ref, o_ref, acc_ref):
    @pl.when(pl.program_id(2) == 0)
    def _init():
        acc_ref[...] = jnp.zeros_like(acc_ref)

    acc_ref[...] += jnp.dot(x_ref[...], w_ref[...],
                            preferred_element_type=jnp.float32)

    @pl.when(pl.program_id(2) == pl.num_programs(2) - 1)
    def _store():
        o_ref[...] = (acc_ref[...] + b_ref[...].astype(jnp.float32)).astype(o_ref.dtype)


def pallas_linear(x: jax.Array, w: jax.Array, b: jax.Array) -> jax.Array:
    """y = x @ w + b.  x: (M, K), w: (K, N), b: (N,) -> (M, N)."""
    M, K = x.shape
    Kw, N = w.shape
    assert K == Kw

    # Large row tiles amortize the ~0.35us per-grid-step overhead.
    if M >= 512:
        blk_m = 512
    else:
        blk_m = _round_up(M, 8)
    M_pad = _round_up(M, blk_m)
    xp = jnp.pad(x, ((0, M_pad - M), (0, 0))) if M_pad != M else x

    blk_n = _pick_tile(N)
    blk_k = _pick_tile(K)

    out = pl.pallas_call(
        _linear_kernel,
        out_shape=jax.ShapeDtypeStruct((M_pad, N), x.dtype),
        grid_spec=pltpu.PrefetchScalarGridSpec(
            num_scalar_prefetch=0,
            grid=(M_pad // blk_m, N // blk_n, K // blk_k),
            in_specs=[
                pl.BlockSpec((blk_m, blk_k), lambda i, j, k: (i, k)),
                pl.BlockSpec((blk_k, blk_n), lambda i, j, k: (k, j)),
                pl.BlockSpec((1, blk_n), lambda i, j, k: (0, j)),
            ],
            out_specs=pl.BlockSpec((blk_m, blk_n), lambda i, j, k: (i, j)),
            scratch_shapes=[pltpu.VMEM((blk_m, blk_n), jnp.float32)],
        ),
        compiler_params=pltpu.CompilerParams(
            dimension_semantics=("parallel", "parallel", "arbitrary"),
            vmem_limit_bytes=32 * 1024 * 1024,
        ),
    )(xp, w, b.reshape(1, N))

    return out[:M] if M_pad != M else out


# ---------------------------------------------------------------------------
# Flash-style causal attention on a flattened lower-triangular grid.
#   qkv: (3, B*H, T, D) with slot 0 = q (pre-scaled), 1 = k, 2 = v.
# ---------------------------------------------------------------------------
def _flash_kernel(qi_ref, ki_ref, q_ref, k_ref, v_ref, o_ref, m_sc, l_sc, acc_sc):
    p = pl.program_id(1)
    qi = qi_ref[p]
    ki = ki_ref[p]

    @pl.when(ki == 0)
    def _init():
        m_sc[...] = jnp.full(m_sc.shape, -jnp.inf, jnp.float32)
        l_sc[...] = jnp.zeros(l_sc.shape, jnp.float32)
        acc_sc[...] = jnp.zeros(acc_sc.shape, jnp.float32)

    def scores():
        # Native-dtype operands into the MXU; f32 accumulation. No explicit k.T.
        return jax.lax.dot_general(
            q_ref[...], k_ref[...],
            dimension_numbers=(((1,), (1,)), ((), ())),
            preferred_element_type=jnp.float32,
        )  # (blk_q, blk_k)

    def update(s):
        m_prev = m_sc[...]
        m_new = jnp.maximum(m_prev, jnp.max(s, axis=-1, keepdims=True))
        alpha = jnp.exp(m_prev - m_new)
        pmat = jnp.exp(s - m_new)
        l_sc[...] = alpha * l_sc[...] + jnp.sum(pmat, axis=-1, keepdims=True)
        pv = jax.lax.dot_general(
            pmat.astype(v_ref.dtype), v_ref[...],
            dimension_numbers=(((1,), (0,)), ((), ())),
            preferred_element_type=jnp.float32,
        )  # (blk_q, D)
        acc_sc[...] = alpha * acc_sc[...] + pv
        m_sc[...] = m_new

    @pl.when(ki < qi)
    def _below_diag():
        # Strictly below the causal diagonal: no mask needed at all.
        update(scores())

    @pl.when(ki == qi)
    def _diag():
        # Diagonal tile: local causal mask from cheap (blk,1)x(1,blk) iotas.
        blk_q = q_ref.shape[0]
        blk_k = k_ref.shape[0]
        row = jax.lax.broadcasted_iota(jnp.int32, (blk_q, 1), 0)
        col = jax.lax.broadcasted_iota(jnp.int32, (1, blk_k), 1)
        update(jnp.where(col <= row, scores(), -jnp.inf))
        # ki == qi is the last key tile for this query tile: finalize.
        inv_l = pl.reciprocal(l_sc[...], approx=True)
        o_ref[...] = (acc_sc[...] * inv_l).astype(o_ref.dtype)


def flash_causal_attention_packed(qkv: jax.Array) -> jax.Array:
    """qkv: (3, BH, T, D), slot 0 = q (already scaled), 1 = k, 2 = v -> (BH, T, D)."""
    _, BH, T, D = qkv.shape

    blk = _pick_attn_block(T)
    T_pad = _round_up(T, blk)
    if T_pad != T:
        qkv = jnp.pad(qkv, ((0, 0), (0, 0), (0, T_pad - T), (0, 0)))
    n_blk = T_pad // blk

    # Flattened lower-triangular (qi, ki) schedule: no dead grid steps, no
    # wasted K/V DMA above the diagonal.  ki == qi is always the last step of
    # each query-tile group.
    qi_list, ki_list = [], []
    for q_i in range(n_blk):
        for k_i in range(q_i + 1):
            qi_list.append(q_i)
            ki_list.append(k_i)
    qi_arr = jnp.asarray(qi_list, jnp.int32)
    ki_arr = jnp.asarray(ki_list, jnp.int32)
    n_pairs = len(qi_list)

    out = pl.pallas_call(
        _flash_kernel,
        out_shape=jax.ShapeDtypeStruct((BH, T_pad, D), qkv.dtype),
        grid_spec=pltpu.PrefetchScalarGridSpec(
            num_scalar_prefetch=2,
            grid=(BH, n_pairs),
            in_specs=[
                pl.BlockSpec((None, None, blk, D),
                             lambda b, p, qi_r, ki_r: (0, b, qi_r[p], 0)),
                pl.BlockSpec((None, None, blk, D),
                             lambda b, p, qi_r, ki_r: (1, b, ki_r[p], 0)),
                pl.BlockSpec((None, None, blk, D),
                             lambda b, p, qi_r, ki_r: (2, b, ki_r[p], 0)),
            ],
            out_specs=pl.BlockSpec((None, blk, D),
                                   lambda b, p, qi_r, ki_r: (b, qi_r[p], 0)),
            scratch_shapes=[
                pltpu.VMEM((blk, 1), jnp.float32),   # running max m
                pltpu.VMEM((blk, 1), jnp.float32),   # running denom l
                pltpu.VMEM((blk, D), jnp.float32),   # running output acc
            ],
        ),
        compiler_params=pltpu.CompilerParams(
            dimension_semantics=("parallel", "arbitrary"),
            vmem_limit_bytes=32 * 1024 * 1024,
        ),
    )(qi_arr, ki_arr, qkv, qkv, qkv)

    if T_pad != T:
        out = out[:, :T, :]
    return out


# ---------------------------------------------------------------------------
# Full module forward
# ---------------------------------------------------------------------------
def causal_self_attention_forward(x, params, *, n_head, head_dim, attn_mult):
    """x: (B, T, n_embd) -> (y, None, None) with y: (B, T, n_embd)."""
    B, T, C = x.shape
    w_attn, b_attn, w_proj, b_proj = params
    HD = n_head * head_dim

    # Fold attn_mult into the q projection once (exact: scale*(xWq+bq) ==
    # x(scale*Wq) + scale*bq).  Under jit with constant params this is free.
    scale = jnp.asarray(attn_mult, w_attn.dtype)
    w_attn_s = w_attn.at[:, :HD].multiply(scale)
    b_attn_s = b_attn.at[:HD].multiply(scale)

    qkv = pallas_linear(x.reshape(B * T, C), w_attn_s, b_attn_s)  # (B*T, 3*H*D)
    # Single fused transpose to (3, B, H, T, D) replaces 3 splits + 3 transposes.
    qkv = qkv.reshape(B, T, 3, n_head, head_dim).transpose(2, 0, 3, 1, 4)
    qkv = qkv.reshape(3, B * n_head, T, head_dim)

    y = flash_causal_attention_packed(qkv)                         # (B*H, T, D)
    y = y.reshape(B, n_head, T, head_dim).transpose(0, 2, 1, 3).reshape(B * T, HD)
    y = pallas_linear(y, w_proj, b_proj).reshape(B, T, C)
    return y, None, None


# ---------------------------------------------------------------------------
# Reference (plain JAX) and test
# ---------------------------------------------------------------------------
def _reference(x, params, *, n_head, head_dim, attn_mult):
    B, T, C = x.shape
    w_attn, b_attn, w_proj, b_proj = params
    qkv = x @ w_attn + b_attn
    q, k, v = jnp.split(qkv, 3, axis=-1)

    def to_heads(t):
        return t.reshape(B, T, n_head, head_dim).transpose(0, 2, 1, 3)

    q, k, v = to_heads(q), to_heads(k), to_heads(v)
    s = jnp.einsum("bhqd,bhkd->bhqk", q, k) * attn_mult
    mask = jnp.tril(jnp.ones((T, T), dtype=bool))
    s = jnp.where(mask, s, -jnp.inf)
    p = jax.nn.softmax(s, axis=-1)
    y = jnp.einsum("bhqk,bhkd->bhqd", p, v)
    y = y.transpose(0, 2, 1, 3).reshape(B, T, n_head * head_dim)
    return y @ w_proj + b_proj


def _run_case(key, B, T, n_embd, n_head, head_dim):
    attn_mult = 1.0 / math.sqrt(head_dim)
    k1, k2, k3, k4, k5 = jax.random.split(key, 5)
    x = jax.random.normal(k1, (B, T, n_embd), dtype=jnp.float32)
    w_attn = jax.random.normal(k2, (n_embd, 3 * n_head * head_dim), jnp.float32) * 0.05
    b_attn = jax.random.normal(k3, (3 * n_head * head_dim,), jnp.float32) * 0.05
    w_proj = jax.random.normal(k4, (n_head * head_dim, n_embd), jnp.float32) * 0.05
    b_proj = jax.random.normal(k5, (n_embd,), jnp.float32) * 0.05
    params = (w_attn, b_attn, w_proj, b_proj)

    y, _, _ = causal_self_attention_forward(
        x, params, n_head=n_head, head_dim=head_dim, attn_mult=attn_mult)
    y = jax.block_until_ready(y)

    y_ref = _reference(x, params, n_head=n_head, head_dim=head_dim,
                       attn_mult=attn_mult)
    assert y.shape == (B, T, n_embd)
    err = float(jnp.max(jnp.abs(y - y_ref)))
    assert jnp.allclose(y, y_ref, atol=2e-2, rtol=2e-2), err


if __name__ == "__main__":
    key = jax.random.PRNGKey(0)
    ka, kb = jax.random.split(key)

    # Small single-tile case (matches the module defaults scaled down).
    _run_case(ka, B=2, T=8, n_embd=32, n_head=4, head_dim=16)
    # Multi-tile case: exercises the lower-triangular grid + T padding.
    _run_case(kb, B=1, T=160, n_embd=48, n_head=2, head_dim=24)

    print("KERNEL_OK")
</pallas_src>

<mosaic_0001>
module attributes {stable_mosaic.version = 11 : i64} {
  func.func @_linear_kernel(%arg0: i32, %arg1: i32, %arg2: i32, %arg3: memref<16x32xf32, #tpu.memory_space<vmem>>, %arg4: memref<32x192xf32, #tpu.memory_space<vmem>>, %arg5: memref<1x192xf32, #tpu.memory_space<vmem>>, %arg6: memref<16x192xf32, #tpu.memory_space<vmem>>, %arg7: memref<16x192xf32, #tpu.memory_space<vmem>>) attributes {dimension_semantics = [#tpu.dimension_semantics<parallel>, #tpu.dimension_semantics<parallel>, #tpu.dimension_semantics<arbitrary>], iteration_bounds = array<i64: 1, 1, 1>, scalar_prefetch = 0 : i64, scratch_operands = 1 : i64, tpu.core_type = #tpu.core_type<tc>, window_params = [{transform_indices = @transform_0, window_bounds = array<i64: 16, 32>}, {transform_indices = @transform_1, window_bounds = array<i64: 32, 192>}, {transform_indices = @transform_2, window_bounds = array<i64: 1, 192>}, {transform_indices = @transform_3, window_bounds = array<i64: 16, 192>}]} {
    %c0_i32 = arith.constant 0 : i32
    %0 = arith.cmpi eq, %arg2, %c0_i32 : i32
    %1 = arith.extui %0 : i1 to i32
    %c0_i32_0 = arith.constant 0 : i32
    %2 = arith.cmpi ne, %1, %c0_i32_0 : i32
    scf.if %2 {
      %cst_10 = arith.constant 0.000000e+00 : f32
      %12 = vector.broadcast %cst_10 : f32 to vector<16x192xf32>
      %c0_11 = arith.constant 0 : index
      %c0_12 = arith.constant 0 : index
      %13 = vector.load %arg7[%c0_11, %c0_12] : memref<16x192xf32, #tpu.memory_space<vmem>>, vector<16x192xf32>
      tpu.vector_store %arg7[%c0_11, %c0_12], %12 {strides = array<i32>} : memref<16x192xf32, #tpu.memory_space<vmem>>, vector<16x192xf32>,
    } else {
    }
    %c0 = arith.constant 0 : index
    %c0_1 = arith.constant 0 : index
    %3 = vector.load %arg7[%c0, %c0_1] : memref<16x192xf32, #tpu.memory_space<vmem>>, vector<16x192xf32>
    %c0_2 = arith.constant 0 : index
    %c0_3 = arith.constant 0 : index
    %4 = vector.load %arg3[%c0_2, %c0_3] : memref<16x32xf32, #tpu.memory_space<vmem>>, vector<16x32xf32>
    %c0_4 = arith.constant 0 : index
    %c0_5 = arith.constant 0 : index
    %5 = vector.load %arg4[%c0_4, %c0_5] : memref<32x192xf32, #tpu.memory_space<vmem>>, vector<32x192xf32>
    %cst = arith.constant dense<0.000000e+00> : vector<16x192xf32>
    %6 = tpu.matmul %4, %5, %cst {dimension_numbers = #tpu.dot_dimension_numbers<[1], [0], [0], [1], [0, 0, 1, 1], [], []>} : vector<16x32xf32>, vector<32x192xf32>, vector<16x192xf32> -> vector<16x192xf32>
    %7 = arith.addf %3, %6 : vector<16x192xf32>
    %c0_6 = arith.constant 0 : index
    %c0_7 = arith.constant 0 : index
    %8 = vector.load %arg7[%c0_6, %c0_7] : memref<16x192xf32, #tpu.memory_space<vmem>>, vector<16x192xf32>
    tpu.vector_store %arg7[%c0_6, %c0_7], %7 {strides = array<i32>} : memref<16x192xf32, #tpu.memory_space<vmem>>, vector<16x192xf32>,
    %c0_i32_8 = arith.constant 0 : i32
    %9 = arith.cmpi eq, %arg2, %c0_i32_8 : i32
    %10 = arith.extui %9 : i1 to i32
    %c0_i32_9 = arith.constant 0 : i32
    %11 = arith.cmpi ne, %10, %c0_i32_9 : i32
    scf.if %11 {
      %c0_10 = arith.constant 0 : index
      %c0_11 = arith.constant 0 : index
      %12 = vector.load %arg7[%c0_10, %c0_11] : memref<16x192xf32, #tpu.memory_space<vmem>>, vector<16x192xf32>
      %c0_12 = arith.constant 0 : index
      %c0_13 = arith.constant 0 : index
      %13 = vector.load %arg5[%c0_12, %c0_13] : memref<1x192xf32, #tpu.memory_space<vmem>>, vector<1x192xf32>
      %14 = vector.broadcast %13 : vector<1x192xf32> to vector<16x192xf32>
      %15 = arith.addf %12, %14 : vector<16x192xf32>
      %c0_14 = arith.constant 0 : index
      %c0_15 = arith.constant 0 : index
      %16 = vector.load %arg6[%c0_14, %c0_15] : memref<16x192xf32, #tpu.memory_space<vmem>>, vector<16x192xf32>
      tpu.vector_store %arg6[%c0_14, %c0_15], %15 {strides = array<i32>} : memref<16x192xf32, #tpu.memory_space<vmem>>, vector<16x192xf32>,
    } else {
    }
    return
  }
  func.func @transform_0(%arg0: i32, %arg1: i32, %arg2: i32) -> (i32, i32) {
    %c0_i32 = arith.constant 0 : i32
    return %arg0, %arg2 : i32, i32
  }
  func.func @transform_1(%arg0: i32, %arg1: i32, %arg2: i32) -> (i32, i32) {
    %c0_i32 = arith.constant 0 : i32
    return %arg2, %arg1 : i32, i32
  }
  func.func @transform_2(%arg0: i32, %arg1: i32, %arg2: i32) -> (i32, i32) {
    %c0_i32 = arith.constant 0 : i32
    %c0_i32_0 = arith.constant 0 : i32
    return %c0_i32, %arg1 : i32, i32
  }
  func.func @transform_3(%arg0: i32, %arg1: i32, %arg2: i32) -> (i32, i32) {
    %c0_i32 = arith.constant 0 : i32
    return %arg0, %arg1 : i32, i32
  }
}

</mosaic_0001>

<bundles_post_ra>
// kernel: tpu_custom_call.1
= control target key start
LH: loop header
LB: loop body
LE: loop exit
PB: predicated region body
PF: predicated region fallthrough
CT: control target
= control target key end

     0   :  { %8 = vsyncpa [#allocation4], 0  ;;  %s340_s0 = inlined_call_operand.hbm [shape: f32[16,32], index: 0, kind: input, shape index: {}]   ;;  %s341_s1 = inlined_call_operand.hbm [shape: f32[32,192], index: 1, kind: input, shape index: {}]   ;;  %s342_s2 = inlined_call_operand.vmem [shape: f32[1,192], index: 2, kind: input, shape index: {}]   ;;  %s343_s3 = inlined_call_operand.hbm [shape: f32[16,192], index: 3, kind: output, shape index: {}]  }
   0x1   :  { %9 = vsyncpa [#allocation7], 0 }
   0x2   :  { %10 = vsyncpa [#allocation5], 0  ;;  %s288_s12 = smov [#allocation3]  }
   0x3   :  { %s16_s13 = sshll.u32 %s288_s12, 4  ;;  %s17_s13 = int_to_ptr.vmem [resolvable:$true] %s16_s13 }
   0x4   :  { %s230_s14 = scalar_lea.vmem %s17_s13, 256  ;;  %p235_p1 = scmp.lt.s32.totalorder %s17_s13, %s17_s13 }
   0x5   :  { %p231_p0 = scmp.ne.s32.totalorder %s17_s13, %s230_s14  ;;  %p236_p2 = scmp.lt.s32.totalorder %s230_s14, %s230_s14 }
   0x7   :  { %p237_p3 = por %p236_p2, %p235_p1 }
   0x9   :  { %p238_p4 = pnand %p237_p3, %p231_p0 }
   0xb   :  { %241 = shalt.err (!%p238_p4)
}
   0xc   :  { %s289_s15 = smov 128   ;;  %s290_s16 = smov 8  }
   0xd   :  { %22 = dma.hbm_to_vmem [thread:$0]  %s340_s0, 256, %s17_s13, [#allocation4], %s289_s15, %s289_s15, %s290_s16  }
   0xe   :  { %s291_s19 = smov [#allocation6]  }
   0xf   :  { %s28_s20 = sshll.u32 %s291_s19, 4  ;;  %s29_s20 = int_to_ptr.vmem [resolvable:$true] %s28_s20 }
  0x10   :  { %s250_s21 = scalar_lea.vmem %s29_s20, 1024  ;;  %p255_p6 = scmp.lt.s32.totalorder %s29_s20, %s29_s20 }
  0x11   :  { %p251_p5 = scmp.ne.s32.totalorder %s29_s20, %s250_s21  ;;  %p256_p7 = scmp.lt.s32.totalorder %s250_s21, %s250_s21 }
  0x13   :  { %p257_p8 = por %p256_p7, %p255_p6 }
  0x15   :  { %p258_p9 = pnand %p257_p8, %p251_p5 }
  0x17   :  { %261 = shalt.err (!%p258_p9)
}
  0x18   :  { %s292_s22 = smov 256   ;;  %s293_s23 = smov 16  }
  0x19   :  { %34 = dma.hbm_to_vmem [thread:$0]  %s341_s1, 1024, %s29_s20, [#allocation7], %s292_s22, %s292_s22, %s293_s23  }
  0x1a   :  { %282 = dma.done.wait [#allocation4], 256  }
  0x1b   :  { %283 = vsyncadd [#allocation4], 4294967040 }
  0x1c   :  { %284 = dma.done.wait [#allocation7], 1024  }
  0x1d   :  { %285 = vsyncadd [#allocation7], 4294966272  ;;  %v294_v0 = vmov 0.0   ;;  %v65_v1 = vld [vmem:[#allocation6 + $0x38] sm:$0xff]  ;;  %v64_v2 = vld [vmem:[#allocation6 + $0x30] sm:$0xff]  ;;  %vm66_vm0 = vcmask 261120   ;;  %v168_v11 = vlaneseq }
  0x1e   :  { %137 = vmatprep.mubr.f32.mxu0 %v294_v0  ;;  %143 = vmatprep.mubr.f32.mxu1 %v294_v0  ;;  %v63_v3 = vld [vmem:[#allocation6 + $0x28] sm:$0xff]  ;;  %v62_v4 = vld [vmem:[#allocation6 + $0x20] sm:$0xff]  ;;  %v61_v5 = vld [vmem:[#allocation6 + $0x18] sm:$0xff]  ;;  %vm48_vm1 = vcmask 523264  }
  0x1f   :  { %97 = vmatprep.subr.mxu0 %v65_v1  ;;  %206 = vmatprep.subr.mxu1 %v65_v1  ;;  %v60_v6 = vld [vmem:[#allocation6 + $0x10] sm:$0xff]  ;;  %v59_v7 = vld [vmem:[#allocation6 + $0x8] sm:$0xff]  ;;  %v58_v8 = vld [vmem:[#allocation6] sm:$0xff]  ;;  %49 = vst.msk [vmem:[#allocation2 + $0x8] sm:$0xff] %vm48_vm1, %v294_v0  ;;  %v169_v12 = vshrl.u32 %v168_v11, 7 }
  0x20   :  { %98 = vmatpush1.msra.mxu0 %v64_v2  ;;  %210 = vmatpush1.msra.mxu1 %v64_v2  ;;  %v56_v9 = vld [vmem:[#allocation3] sm:$0xff]  ;;  %v57_v10 = vld [vmem:[#allocation3 + $0x8] sm:$0xff]  ;;  %51 = vst.msk [vmem:[#allocation2 + $0x18] sm:$0xff] %vm48_vm1, %v294_v0 }
  0x21   :  { %99 = vmatprep.subr.mxu0 %v63_v3  ;;  %207 = vmatprep.subr.mxu1 %v63_v3  ;;  %v170_v13 = vsub.s32 0, %v169_v12  ;;  %v166_v14 = vld [vmem:[%s342_s2] sm:$0x3]  ;;  %v174_v26 = vsub.s32 1, %v169_v12  ;;  %s295_s2 = smov [#allocation8]  }
  0x22   :  { %100 = vmatpush1.msra.mxu0 %v62_v4  ;;  %211 = vmatpush1.msra.mxu1 %v62_v4  ;;  %s191_s26 = sshll.u32 %s295_s2, 4  ;;  %s192_s26 = int_to_ptr.vmem [resolvable:$true] %s191_s26 }
  0x23   :  { %101 = vmatprep.subr.mxu0 %v61_v5  ;;  %208 = vmatprep.subr.mxu1 %v61_v5  ;;  %v171_v15 = vrot.slane %v166_v14, %v170_v13  ;;  %v175_v27 = vrot.slane %v166_v14, %v174_v26  ;;  %s262_s27 = scalar_lea.vmem %s192_s26, 512  ;;  %p267_p11 = scmp.lt.s32.totalorder %s192_s26, %s192_s26 }
  0x24   :  { %102 = vmatpush1.msra.mxu0 %v60_v6  ;;  %212 = vmatpush1.msra.mxu1 %v60_v6  ;;  %p263_p10 = scmp.ne.s32.totalorder %s192_s26, %s262_s27  ;;  %p268_p12 = scmp.lt.s32.totalorder %s262_s27, %s262_s27 }
  0x25   :  { %103 = vmatprep.subr.mxu0 %v59_v7  ;;  %209 = vmatprep.subr.mxu1 %v59_v7 }
  0x26   :  { %104 = vmatpush1.msra.mxu0 %v58_v8  ;;  %213 = vmatpush1.msra.mxu1 %v58_v8  ;;  %v53_v18 = vld [vmem:[#allocation2 + $0x8] sm:$0xff]  ;;  %p269_p13 = por %p268_p12, %p267_p11 }
  0x27   :  { %204 = vmatmul.mubr.msk.f32.vlgmr.msra.gmra.mxu0 %vm66_vm0, %v56_v9  ;;  %205 = vmatmul.mubr.msk.f32.vlgmr.msra.gmra.mxu1 %vm66_vm0, %v57_v10  ;;  %v55_v19 = vld [vmem:[#allocation2 + $0x18] sm:$0xff] }
  0x28   :  { %p270_p0 = pnand %p269_p13, %p263_p10 }
  0xe7   :  { %v139_v16 = vpop.f32.mrf.mxu0  ;;  %v145_v17 = vpop.f32.mrf.mxu1 }
  0xe8   :  { %v178_v24 = vadd.f32 %v171_v15, %v139_v16  ;;  %v180_v25 = vadd.f32 %v171_v15, %v145_v17 }
  0xe9   :  { %v141_v20 = vpop.f32.mrf.mxu0  ;;  %v147_v21 = vpop.f32.mrf.mxu1 }
  0xea   :  { %v151_v22 = vadd.f32 %v141_v20, %v53_v18  ;;  %v153_v23 = vadd.f32 %v147_v21, %v55_v19  ;;  %182 = vst [vmem:[#allocation8] sm:$0xff] %v178_v24  ;;  %184 = vst [vmem:[#allocation8 + $0x10] sm:$0xff] %v180_v25 }
  0xec   :  { %156 = vst.msk [vmem:[#allocation2 + $0x8] sm:$0xff] %vm48_vm1, %v151_v22  ;;  %158 = vst.msk [vmem:[#allocation2 + $0x18] sm:$0xff] %vm48_vm1, %v153_v23 }
  0xf3   :  { %v163_v28 = vld [vmem:[#allocation2 + $0x8] sm:$0xff]  ;;  %v165_v29 = vld [vmem:[#allocation2 + $0x18] sm:$0xff] }
  0xf4   :  { %v179_v30 = vadd.f32 %v175_v27, %v163_v28  ;;  %v181_v31 = vadd.f32 %v175_v27, %v165_v29 }
  0xf6   :  { %183 = vst.msk [vmem:[#allocation8 + $0x8] sm:$0xff] %vm48_vm1, %v179_v30  ;;  %185 = vst.msk [vmem:[#allocation8 + $0x18] sm:$0xff] %vm48_vm1, %v181_v31 }
  0xf7   :  { %273 = shalt.err (!%p270_p0)
}
  0xf8   :  { %197 = dma.vmem_to_hbm [thread:$0]  %s192_s26, 512, %s343_s3, [#allocation5], %s292_s22, %s292_s22, %s293_s23  }
  0xf9   :  { %286 = dma.done.wait [#allocation5], 512  }
  0xfa   :  { %287 = vsyncadd [#allocation5], 4294966784 }
  0xfb   :  { %201 = vsyncpa [#allocation4], 1 }
  0xfc   :  { %202 = vsyncpa [#allocation7], 1 }
  0xfd   :  { %203 = vsyncpa [#allocation5], 1 }

</bundles_post_ra>
